<compile_context>
chip_gen: v7x
topology: tpu7x:2x2x1
jax: 0.10.0
libtpu: 0.0.40
codegen_flags: <defaults>
</compile_context>

<pallas_src>
import functools

import jax
import jax.numpy as jnp
from jax import lax
from jax.experimental import pallas as pl
from jax.experimental.pallas import tpu as pltpu

_EPS = 1e-12  # F.normalize default eps


# --------------------------------------------------------------------------- #
# Chip-generation profile (VMEM budget + megacore-ness) for tile pickers.
# --------------------------------------------------------------------------- #
def _chip_profile():
    kind = ""
    try:
        dev = jax.devices()[0]
        if dev.platform == "tpu":
            kind = dev.device_kind.lower()
    except Exception:
        pass
    if "v7" in kind or "7x" in kind:
        # 64 MiB physical VMEM, 2 TensorCores -> keep >= 2 parallel grid steps.
        return {"vmem_limit": 48 * 2**20, "min_grid_steps": 2}
    if "v6" in kind:
        # 128 MiB physical VMEM, 1 TensorCore -> one big tile is fine.
        return {"vmem_limit": 100 * 2**20, "min_grid_steps": 1}
    if "v5" in kind and ("lite" in kind or "5e" in kind):
        return {"vmem_limit": 100 * 2**20, "min_grid_steps": 1}
    # Unknown (v4/v5p megacore, emulator, ...): conservative budget, 2 cores.
    return {"vmem_limit": 48 * 2**20, "min_grid_steps": 2}


# --------------------------------------------------------------------------- #
# NetVLAD pooling kernel: Bt batch elements per grid step.
# --------------------------------------------------------------------------- #
def _netvlad_kernel(x_ref, c_ref, b_ref, o_ref, *, alpha, bt, compute_dtype):
    L = x_ref.shape[1]
    D = x_ref.shape[2]
    K = c_ref.shape[0]

    x = x_ref[...].astype(jnp.float32)          # (bt, L, D)
    c = c_ref[...].astype(jnp.float32)          # (K, D)  centroids
    bias = b_ref[...].astype(jnp.float32)       # (1, K)  = -alpha * ||c_k||

    # F.normalize(x, dim=-1): x * rsqrt(max(||x||^2, eps^2))  (EUP rsqrt)
    xn = x * lax.rsqrt(jnp.maximum(jnp.sum(x * x, axis=-1, keepdims=True),
                                   _EPS * _EPS))
    xn_c = xn.astype(compute_dtype)

    # 1x1 conv with tied weights: fold the 2*alpha scale into the small (K, D)
    # centroid operand (once per grid step) instead of the (bt*L, K) logits.
    c_scaled = (2.0 * alpha * c).astype(compute_dtype)

    # Assignment logits as one (bt*L, D) x (D, K) MXU matmul (bf16 operands,
    # f32 accumulation).  Leading-dim collapse is a layout no-op: the wrapper
    # forces bt == 1 unless L % 8 == 0.
    logits = lax.dot_general(xn_c.reshape(bt * L, D), c_scaled,
                             (((1,), (1,)), ((), ())),
                             preferred_element_type=jnp.float32) + bias

    # softmax over clusters; denominator reciprocal on the EUP.
    logits = logits - jnp.max(logits, axis=-1, keepdims=True)
    e = jnp.exp(logits)
    a = e * pl.reciprocal(jnp.sum(e, axis=-1, keepdims=True), approx=True)
    a3 = a.reshape(bt, L, K).astype(compute_dtype)               # (bt, L, K)

    # vlad[b,k,d] = sum_l a[b,l,k]*xn[b,l,d]  -  c[k,d] * sum_l a[b,l,k]
    # Both terms as batched MXU matmuls (transposes folded into dot_general);
    # the ones-column contraction yields the cluster mass already laid out as
    # (bt, K, 1), so no lane<->sublane relayout is needed.
    agg = lax.dot_general(a3, xn_c, (((1,), (1,)), ((0,), (0,))),
                          preferred_element_type=jnp.float32)    # (bt, K, D)
    ones_l = jnp.ones((bt, L, 1), compute_dtype)
    s = lax.dot_general(a3, ones_l, (((1,), (1,)), ((0,), (0,))),
                        preferred_element_type=jnp.float32)      # (bt, K, 1)
    vlad = agg - c[None, :, :] * s

    # intra-normalization (per cluster row, over D)
    vlad = vlad * lax.rsqrt(
        jnp.maximum(jnp.sum(vlad * vlad, axis=-1, keepdims=True), _EPS * _EPS))
    # global L2 normalization over all K*D entries of each batch element
    gsq = jnp.sum(jnp.sum(vlad * vlad, axis=-1, keepdims=True),
                  axis=-2, keepdims=True)                         # (bt, 1, 1)
    vlad = vlad * lax.rsqrt(jnp.maximum(gsq, _EPS * _EPS))

    o_ref[...] = vlad.astype(o_ref.dtype)        # single (bt, K, D) block store


def _netvlad_vmem_bytes(bt, L, D, K, in_itemsize):
    blk_in = 2 * bt * L * D * in_itemsize          # double-buffered input block
    blk_out = 2 * bt * K * D * 4                   # double-buffered output block
    inter = bt * L * (D * 12 + K * 14)             # x/xn f32+bf16, logits/e/a(+bf16)
    params = 2 * (K * D * 6 + K * 4)               # centroids f32+bf16, bias
    return blk_in + blk_out + inter + params


def _pick_batch_tile(B, L, D, K, in_itemsize, profile):
    """Largest Bt dividing B that fits the generation's VMEM budget.

    Single-TensorCore chips (v5e/v6e) may collapse the grid to one step; on
    megacore parts (v7x) we keep >= 2 parallel steps so both cores stay busy.
    """
    if L % 8 != 0:
        return 1       # keep the (bt, L, D) -> (bt*L, D) collapse a layout no-op
    budget = profile["vmem_limit"] // 2            # headroom for compiler scratch
    min_steps = min(profile["min_grid_steps"], B)
    best = 1
    for bt in range(1, B + 1):
        if B % bt or B // bt < min_steps:
            continue
        if _netvlad_vmem_bytes(bt, L, D, K, in_itemsize) <= budget:
            best = bt
    return best


def netvlad_pool(x, centroids, bias, alpha, *,
                 compute_dtype=jnp.bfloat16, batch_tile=None):
    """x: (B, L, DIM) -> (B, K*DIM) VLAD descriptors (NetVLAD.forward)."""
    B, L, D = x.shape
    K = centroids.shape[0]
    profile = _chip_profile()
    bt = batch_tile if batch_tile is not None else _pick_batch_tile(
        B, L, D, K, jnp.dtype(x.dtype).itemsize, profile)
    assert B % bt == 0, (B, bt)
    bias2d = bias.reshape(1, K)

    vlad = pl.pallas_call(
        functools.partial(_netvlad_kernel, alpha=float(alpha), bt=bt,
                          compute_dtype=compute_dtype),
        out_shape=jax.ShapeDtypeStruct((B, K, D), jnp.float32),
        grid=(B // bt,),
        in_specs=[
            pl.BlockSpec((bt, L, D), lambda i: (i, 0, 0)),
            pl.BlockSpec((K, D), lambda i: (0, 0)),
            pl.BlockSpec((1, K), lambda i: (0, 0)),
        ],
        out_specs=pl.BlockSpec((bt, K, D), lambda i: (i, 0, 0)),
        compiler_params=pltpu.CompilerParams(
            dimension_semantics=("parallel",),
            vmem_limit_bytes=profile["vmem_limit"]),
    )(x, centroids, bias2d)

    # flatten(start_dim=1): free row-major XLA reshape on contiguous output.
    # TODO(synk): a fully lane-dense (bt, K*D) in-kernel store needs a
    #             sublane->lane reshape of (K, D) that is not reliably
    #             lowerable for D < 128 lanes; the flatten stays in the wrapper.
    return vlad.reshape(B, K * D)


# --------------------------------------------------------------------------- #
# Pairwise distance / overlap kernel, Gram-matrix form, 2-D (row, col) tiled.
#   d^2(i,j) = ||g_i||^2 + ||g_j||^2 - 2 * <g_i, g_j>
# --------------------------------------------------------------------------- #
def _pairdist_kernel(sqr_ref, sqc_ref, gr_ref, gc_ref, o_ref, *,
                     overlap, row_tile, col_tile, compute_dtype):
    # bf16 operands on the MXU, f32 accumulation.
    gr = gr_ref[...].astype(compute_dtype)            # (Tr, D)
    gc = gc_ref[...].astype(compute_dtype)            # (Tc, D)
    gram = lax.dot_general(gr, gc, (((1,), (1,)), ((), ())),
                           preferred_element_type=jnp.float32)     # (Tr, Tc)
    # Squared norms are precomputed once (f32) and streamed as tiny
    # (Tr,1)/(1,Tc) blocks -> no per-step recomputation of g*g.
    d = jnp.sqrt(jnp.maximum(sqr_ref[...] + sqc_ref[...] - 2.0 * gram, 0.0))

    if overlap:
        # fused epilogue: overlap = (2 - d)/2 with zeroed diagonal
        r0 = pl.program_id(0) * row_tile
        c0 = pl.program_id(1) * col_tile
        ri = lax.broadcasted_iota(jnp.int32, d.shape, 0) + r0
        ci = lax.broadcasted_iota(jnp.int32, d.shape, 1) + c0
        o_ref[...] = jnp.where(ri == ci, 0.0, 1.0 - 0.5 * d)
    else:
        o_ref[...] = d


def _pairwise(g, *, overlap, compute_dtype=jnp.bfloat16):
    N, D = g.shape
    profile = _chip_profile()
    t = 256 if N >= 1024 else 128          # keep the MXU M dim filled
    n_pad = ((N + t - 1) // t) * t         # pad instead of shrinking the tile
    sq = jnp.sum(g.astype(jnp.float32) * g.astype(jnp.float32), axis=-1)
    if n_pad != N:
        g = jnp.pad(g, ((0, n_pad - N), (0, 0)))
        sq = jnp.pad(sq, ((0, n_pad - N),))
    sq_row = sq.reshape(n_pad, 1)
    sq_col = sq.reshape(1, n_pad)

    out = pl.pallas_call(
        functools.partial(_pairdist_kernel, overlap=overlap, row_tile=t,
                          col_tile=t, compute_dtype=compute_dtype),
        out_shape=jax.ShapeDtypeStruct((n_pad, n_pad), jnp.float32),
        grid=(n_pad // t, n_pad // t),
        in_specs=[
            pl.BlockSpec((t, 1), lambda i, j: (i, 0)),
            pl.BlockSpec((1, t), lambda i, j: (0, j)),
            pl.BlockSpec((t, D), lambda i, j: (i, 0)),
            pl.BlockSpec((t, D), lambda i, j: (j, 0)),
        ],
        out_specs=pl.BlockSpec((t, t), lambda i, j: (i, j)),
        compiler_params=pltpu.CompilerParams(
            dimension_semantics=("parallel", "parallel"),
            vmem_limit_bytes=profile["vmem_limit"]),
    )(sq_row, sq_col, g, g)
    return out if n_pad == N else out[:N, :N]


def pairwise_dist(g, compute_dtype=jnp.bfloat16):
    """torch.cdist(g, g, p=2) for (N, D) global descriptors."""
    return _pairwise(g, overlap=False, compute_dtype=compute_dtype)


def overlap_matrix(g, compute_dtype=jnp.bfloat16):
    """(2 - cdist)/2 with zeroed diagonal, fused in one kernel."""
    return _pairwise(g, overlap=True, compute_dtype=compute_dtype)


# --------------------------------------------------------------------------- #
# super_global refinement (eval path).  Distances come from the Pallas Gram
# kernel; top-k / gather / weighted mean are tiny glue.
# TODO(synk): top-k neighbor selection + gather has no clean Pallas equivalent;
#             kept in plain JAX.
# --------------------------------------------------------------------------- #
def super_global(global_desc, refine_k, beta):
    n = global_desc.shape[0]
    k = min(refine_k + 1, n)
    dis = pairwise_dist(global_desc)                    # (N, N)
    _, neighbor_idx = jax.lax.top_k(-dis, k)            # smallest distances
    neighbor_desc = global_desc[neighbor_idx]           # (N, k, D)
    weight = jnp.sum(neighbor_desc * global_desc[:, None, :], axis=-1,
                     keepdims=True)
    weight = weight.at[:, 1:, :].multiply(beta)
    refined = jnp.sum(weight * neighbor_desc, axis=1) / jnp.sum(weight, axis=1)
    return refined


# --------------------------------------------------------------------------- #
# Full predictor forward (eval mode: dropout = identity, super_global on).
# --------------------------------------------------------------------------- #
def netvlad_predictor_forward(desc_list, centroids, bias, *, alpha, refine_k, beta):
    vlads = [netvlad_pool(d, centroids, bias, alpha) for d in desc_list]
    global_desc = jnp.concatenate(vlads, axis=0)        # (N, K*DIM)
    global_desc = super_global(global_desc, refine_k, beta)
    overlap = overlap_matrix(global_desc)               # mode == 'overlap'
    return {"overlap_pred": overlap}


# --------------------------------------------------------------------------- #
# Pure-JAX reference mirroring the kernel math (incl. bf16 MXU operands).
# --------------------------------------------------------------------------- #
def _netvlad_pool_ref(x, centroids, bias, alpha, compute_dtype=jnp.bfloat16):
    x = x.astype(jnp.float32)
    c = centroids.astype(jnp.float32)
    xn = x * lax.rsqrt(jnp.maximum(jnp.sum(x * x, axis=-1, keepdims=True),
                                   _EPS * _EPS))
    xn_c = xn.astype(compute_dtype)
    c_scaled = (2.0 * alpha * c).astype(compute_dtype)
    logits = jnp.einsum("bld,kd->blk", xn_c, c_scaled,
                        preferred_element_type=jnp.float32) \
        + bias.reshape(1, 1, -1).astype(jnp.float32)
    a = jax.nn.softmax(logits, axis=-1)
    a_c = a.astype(compute_dtype)
    agg = jnp.einsum("blk,bld->bkd", a_c, xn_c,
                     preferred_element_type=jnp.float32)
    s = jnp.sum(a_c.astype(jnp.float32), axis=1)                     # (B, K)
    vlad = agg - c[None, :, :] * s[:, :, None]
    vlad = vlad * lax.rsqrt(
        jnp.maximum(jnp.sum(vlad * vlad, axis=-1, keepdims=True), _EPS * _EPS))
    vlad = vlad.reshape(x.shape[0], -1)
    vlad = vlad * lax.rsqrt(
        jnp.maximum(jnp.sum(vlad * vlad, axis=-1, keepdims=True), _EPS * _EPS))
    return vlad


if __name__ == "__main__":
    # Small, module-consistent shapes.
    B, L = 4, 64          # batch per descriptor tensor, local features per cloud
    K, DIM = 16, 32       # num_clusters, feature dim
    ALPHA = 100.0
    REFINE_K = 2
    BETA = 0.5

    key = jax.random.PRNGKey(0)
    k_c, k_d0, k_d1 = jax.random.split(key, 3)

    # Parameter init mirroring NetVLAD.__init__ / _init_params:
    #   centroids ~ U[0,1), conv.weight = 2*alpha*centroids,
    #   conv.bias = -alpha * centroids.norm(dim=1)
    centroids = jax.random.uniform(k_c, (K, DIM), jnp.float32)
    conv_bias = -ALPHA * jnp.sqrt(jnp.sum(centroids * centroids, axis=-1))   # (K,)

    # data_dict['descriptors'] : list of (B, L, DIM) descriptor tensors
    desc0 = jax.random.normal(k_d0, (B, L, DIM), jnp.float32)
    desc1 = jax.random.normal(k_d1, (B, L, DIM), jnp.float32)

    # --- NetVLAD pooling kernel vs. mirrored reference ---------------------- #
    vlad0 = jax.block_until_ready(netvlad_pool(desc0, centroids, conv_bias, ALPHA))
    vlad0_ref = _netvlad_pool_ref(desc0, centroids, conv_bias, ALPHA)
    assert vlad0.shape == (B, K * DIM)
    pool_err = float(jnp.max(jnp.abs(vlad0 - vlad0_ref)))
    assert pool_err < 2e-2, f"netvlad_pool mismatch: {pool_err}"

    # --- Gram-form distance kernel ------------------------------------------ #
    vlad1 = netvlad_pool(desc1, centroids, conv_bias, ALPHA)
    g = jnp.concatenate([vlad0, vlad1], axis=0)
    d = jax.block_until_ready(pairwise_dist(g))

    # Tight check against a reference mirroring the kernel's bf16 gram math.
    g_bf = g.astype(jnp.bfloat16).astype(jnp.float32)
    sq = jnp.sum(g * g, axis=-1)
    d_mirror = jnp.sqrt(jnp.maximum(
        sq[:, None] + sq[None, :] - 2.0 * (g_bf @ g_bf.T), 0.0))
    mirror_err = float(jnp.max(jnp.abs(d - d_mirror)))
    assert mirror_err < 5e-3, f"pairwise_dist mismatch vs mirror: {mirror_err}"

    # Loose sanity check against exact f32 cdist (bf16 operand error ~<0.07
    # worst-case on the zero diagonal for D=512 unit-norm descriptors).
    d_exact = jnp.sqrt(jnp.maximum(
        jnp.sum((g[:, None, :] - g[None, :, :]) ** 2, axis=-1), 0.0))
    exact_err = float(jnp.max(jnp.abs(d - d_exact)))
    assert exact_err < 1e-1, f"pairwise_dist far from exact cdist: {exact_err}"

    # --- Full predictor forward --------------------------------------------- #
    prediction = netvlad_predictor_forward(
        [desc0, desc1], centroids, conv_bias,
        alpha=ALPHA, refine_k=REFINE_K, beta=BETA,
    )
    overlap = jax.block_until_ready(prediction["overlap_pred"])
    assert overlap.shape == (2 * B, 2 * B)
    assert bool(jnp.all(jnp.isfinite(overlap)))
    assert float(jnp.max(jnp.abs(jnp.diagonal(overlap)))) == 0.0

    print("KERNEL_OK")
</pallas_src>

<mosaic_0001>
module attributes {stable_mosaic.version = 11 : i64} {
  func.func @_netvlad_kernel(%arg0: i32, %arg1: memref<2x64x32xf32, #tpu.memory_space<vmem>>, %arg2: memref<16x32xf32, #tpu.memory_space<vmem>>, %arg3: memref<1x16xf32, #tpu.memory_space<vmem>>, %arg4: memref<2x16x32xf32, #tpu.memory_space<vmem>>) attributes {dimension_semantics = [#tpu.dimension_semantics<parallel>], iteration_bounds = array<i64: 2>, scalar_prefetch = 0 : i64, scratch_operands = 0 : i64, tpu.core_type = #tpu.core_type<tc>, window_params = [{transform_indices = @transform_0, window_bounds = array<i64: 2, 64, 32>}, {pipeline_mode = #tpu.pipeline_mode<synchronous>, transform_indices = @transform_1, window_bounds = array<i64: 16, 32>}, {pipeline_mode = #tpu.pipeline_mode<synchronous>, transform_indices = @transform_2, window_bounds = array<i64: 1, 16>}, {transform_indices = @transform_3, window_bounds = array<i64: 2, 16, 32>}]} {
    %c0 = arith.constant 0 : index
    %c0_0 = arith.constant 0 : index
    %c0_1 = arith.constant 0 : index
    %0 = vector.load %arg1[%c0, %c0_0, %c0_1] : memref<2x64x32xf32, #tpu.memory_space<vmem>>, vector<2x64x32xf32>
    %c0_2 = arith.constant 0 : index
    %c0_3 = arith.constant 0 : index
    %1 = vector.load %arg2[%c0_2, %c0_3] : memref<16x32xf32, #tpu.memory_space<vmem>>, vector<16x32xf32>
    %c0_4 = arith.constant 0 : index
    %c0_5 = arith.constant 0 : index
    %2 = vector.load %arg3[%c0_4, %c0_5] : memref<1x16xf32, #tpu.memory_space<vmem>>, vector<1x16xf32>
    %3 = arith.mulf %0, %0 : vector<2x64x32xf32>
    %cst = arith.constant dense<0.000000e+00> : vector<2x64xf32>
    %4 = vector.multi_reduction <add>, %3, %cst [2] : vector<2x64x32xf32> to vector<2x64xf32>
    %5 = vector.shape_cast %4 : vector<2x64xf32> to vector<2x64x1xf32>
    %cst_6 = arith.constant 1.000000e-24 : f32
    %6 = vector.broadcast %cst_6 : f32 to vector<2x64x1xf32>
    %7 = arith.maximumf %5, %6 : vector<2x64x1xf32>
    %8 = math.rsqrt %7 : vector<2x64x1xf32>
    %9 = vector.broadcast %8 : vector<2x64x1xf32> to vector<2x64x32xf32>
    %10 = arith.mulf %0, %9 : vector<2x64x32xf32>
    %11 = arith.truncf %10 : vector<2x64x32xf32> to vector<2x64x32xbf16>
    %cst_7 = arith.constant 2.000000e+02 : f32
    %12 = vector.broadcast %cst_7 : f32 to vector<16x32xf32>
    %13 = arith.mulf %12, %1 : vector<16x32xf32>
    %14 = arith.truncf %13 : vector<16x32xf32> to vector<16x32xbf16>
    %15 = vector.shape_cast %11 : vector<2x64x32xbf16> to vector<128x32xbf16>
    %cst_8 = arith.constant dense<0.000000e+00> : vector<128x16xf32>
    %16 = tpu.matmul %15, %14, %cst_8 {dimension_numbers = #tpu.dot_dimension_numbers<[1], [1], [0], [0], [0, 0, 1, 0], [], []>} : vector<128x32xbf16>, vector<16x32xbf16>, vector<128x16xf32> -> vector<128x16xf32>
    %17 = vector.broadcast %2 : vector<1x16xf32> to vector<128x16xf32>
    %18 = arith.addf %16, %17 : vector<128x16xf32>
    %cst_9 = arith.constant dense<0xFF800000> : vector<128xf32>
    %19 = vector.multi_reduction <maximumf>, %18, %cst_9 [1] : vector<128x16xf32> to vector<128xf32>
    %20 = vector.shape_cast %19 : vector<128xf32> to vector<128x1xf32>
    %21 = vector.broadcast %20 : vector<128x1xf32> to vector<128x16xf32>
    %22 = arith.subf %18, %21 : vector<128x16xf32>
    %23 = math.exp %22 : vector<128x16xf32>
    %cst_10 = arith.constant dense<0.000000e+00> : vector<128xf32>
    %24 = vector.multi_reduction <add>, %23, %cst_10 [1] : vector<128x16xf32> to vector<128xf32>
    %25 = vector.shape_cast %24 : vector<128xf32> to vector<128x1xf32>
    %26 = tpu.reciprocal %25 {approx = true} : vector<128x1xf32> -> vector<128x1xf32>
    %27 = vector.broadcast %26 : vector<128x1xf32> to vector<128x16xf32>
    %28 = arith.mulf %23, %27 : vector<128x16xf32>
    %29 = vector.shape_cast %28 : vector<128x16xf32> to vector<2x64x16xf32>
    %30 = arith.truncf %29 : vector<2x64x16xf32> to vector<2x64x16xbf16>
    %cst_11 = arith.constant dense<0.000000e+00> : vector<2x16x32xf32>
    %31 = tpu.matmul %30, %11, %cst_11 {dimension_numbers = #tpu.dot_dimension_numbers<[1], [1], [2], [2], [0, 0, 0, 2, 1, 2], [0], [0]>} : vector<2x64x16xbf16>, vector<2x64x32xbf16>, vector<2x16x32xf32> -> vector<2x16x32xf32>
    %cst_12 = arith.constant 1.000000e+00 : bf16
    %32 = vector.broadcast %cst_12 : bf16 to vector<2x64x1xbf16>
    %cst_13 = arith.constant dense<0.000000e+00> : vector<2x16x1xf32>
    %33 = tpu.matmul %30, %32, %cst_13 {dimension_numbers = #tpu.dot_dimension_numbers<[1], [1], [2], [2], [0, 0, 0, 2, 1, 2], [0], [0]>} : vector<2x64x16xbf16>, vector<2x64x1xbf16>, vector<2x16x1xf32> -> vector<2x16x1xf32>
    %34 = vector.shape_cast %1 : vector<16x32xf32> to vector<1x16x32xf32>
    %35 = vector.broadcast %34 : vector<1x16x32xf32> to vector<2x16x32xf32>
    %36 = vector.broadcast %33 : vector<2x16x1xf32> to vector<2x16x32xf32>
    %37 = arith.mulf %35, %36 : vector<2x16x32xf32>
    %38 = arith.subf %31, %37 : vector<2x16x32xf32>
    %39 = arith.mulf %38, %38 : vector<2x16x32xf32>
    %cst_14 = arith.constant dense<0.000000e+00> : vector<2x16xf32>
    %40 = vector.multi_reduction <add>, %39, %cst_14 [2] : vector<2x16x32xf32> to vector<2x16xf32>
    %41 = vector.shape_cast %40 : vector<2x16xf32> to vector<2x16x1xf32>
    %cst_15 = arith.constant 1.000000e-24 : f32
    %42 = vector.broadcast %cst_15 : f32 to vector<2x16x1xf32>
    %43 = arith.maximumf %41, %42 : vector<2x16x1xf32>
    %44 = math.rsqrt %43 : vector<2x16x1xf32>
    %45 = vector.broadcast %44 : vector<2x16x1xf32> to vector<2x16x32xf32>
    %46 = arith.mulf %38, %45 : vector<2x16x32xf32>
    %47 = arith.mulf %46, %46 : vector<2x16x32xf32>
    %cst_16 = arith.constant dense<0.000000e+00> : vector<2x16xf32>
    %48 = vector.multi_reduction <add>, %47, %cst_16 [2] : vector<2x16x32xf32> to vector<2x16xf32>
    %49 = vector.shape_cast %48 : vector<2x16xf32> to vector<2x16x1xf32>
    %cst_17 = arith.constant dense<0.000000e+00> : vector<2x1xf32>
    %50 = vector.multi_reduction <add>, %49, %cst_17 [1] : vector<2x16x1xf32> to vector<2x1xf32>
    %51 = vector.shape_cast %50 : vector<2x1xf32> to vector<2x1x1xf32>
    %cst_18 = arith.constant 1.000000e-24 : f32
    %52 = vector.broadcast %cst_18 : f32 to vector<2x1x1xf32>
    %53 = arith.maximumf %51, %52 : vector<2x1x1xf32>
    %54 = math.rsqrt %53 : vector<2x1x1xf32>
    %55 = vector.broadcast %54 : vector<2x1x1xf32> to vector<2x16x32xf32>
    %56 = arith.mulf %46, %55 : vector<2x16x32xf32>
    %c0_19 = arith.constant 0 : index
    %c0_20 = arith.constant 0 : index
    %c0_21 = arith.constant 0 : index
    %57 = vector.load %arg4[%c0_19, %c0_20, %c0_21] : memref<2x16x32xf32, #tpu.memory_space<vmem>>, vector<2x16x32xf32>
    tpu.vector_store %arg4[%c0_19, %c0_20, %c0_21], %56 {strides = array<i32>} : memref<2x16x32xf32, #tpu.memory_space<vmem>>, vector<2x16x32xf32>,
    return
  }
  func.func @transform_0(%arg0: i32) -> (i32, i32, i32) {
    %c0_i32 = arith.constant 0 : i32
    %c0_i32_0 = arith.constant 0 : i32
    %c0_i32_1 = arith.constant 0 : i32
    return %arg0, %c0_i32, %c0_i32_0 : i32, i32, i32
  }
  func.func @transform_1(%arg0: i32) -> (i32, i32) {
    %c0_i32 = arith.constant 0 : i32
    %c0_i32_0 = arith.constant 0 : i32
    %c0_i32_1 = arith.constant 0 : i32
    return %c0_i32, %c0_i32_0 : i32, i32
  }
  func.func @transform_2(%arg0: i32) -> (i32, i32) {
    %c0_i32 = arith.constant 0 : i32
    %c0_i32_0 = arith.constant 0 : i32
    %c0_i32_1 = arith.constant 0 : i32
    return %c0_i32, %c0_i32_0 : i32, i32
  }
  func.func @transform_3(%arg0: i32) -> (i32, i32, i32) {
    %c0_i32 = arith.constant 0 : i32
    %c0_i32_0 = arith.constant 0 : i32
    %c0_i32_1 = arith.constant 0 : i32
    return %arg0, %c0_i32, %c0_i32_0 : i32, i32, i32
  }
}

</mosaic_0001>

<bundles_post_ra>
// kernel: tpu_custom_call.1
= control target key start
LH: loop header
LB: loop body
LE: loop exit
PB: predicated region body
PF: predicated region fallthrough
CT: control target
= control target key end

     0   :  { %8 = vsyncpa [#allocation3], 0  ;;  %s1854_s0 = inlined_call_operand.vmem [shape: f32[4,64,32], index: 0, kind: input, shape index: {}]   ;;  %s1855_s1 = inlined_call_operand.vmem [shape: f32[16,32], index: 1, kind: input, shape index: {}]   ;;  %s1856_s2 = inlined_call_operand.vmem [shape: f32[1,16], index: 2, kind: input, shape index: {}]   ;;  %s1857_s3 = inlined_call_operand.hbm [shape: f32[4,16,32], index: 3, kind: output, shape index: {}]  }
   0x1   :  { %10 = vsyncpa [#allocation3 + $0x1], 0  ;;  %s1385_s12 = smov 0   ;;  %s1387_s13 = smov 0  }
   0x2   :  { %s1389_s14 = smov 0   ;;  %s1391_s15 = smov 0  }
   0x3 LB: > { %s1406_s16 = sadd.s32 4294967295, %s1356_s15   ;;  %s1013_s17 = sadd.s32 4294967294, %s1356_s15   ;;  %s1356_s15 = sphi %s1391_s15, %s1863_s15   ;;  %s1352_s14 = sphi %s1389_s14, %s1862_s14   ;;  %s1348_s13 = sphi %s1387_s13, %s1861_s13   ;;  %s1344_s12 = sphi %s1385_s12, %s1860_s12  }
   0x4   : > { %s1410_s18 = sadd.s32 1, %s1356_s15   ;;  %s91_s19 = sadd.s32 1, %s1352_s14 }
   0x5   : > { %s88_s20 = ssub.s32 %s1356_s15, %s1410_s18  ;;  %p101_p0 = scmp.ne.s32.totalorder %s1352_s14, %s1348_s13 }
   0x6   : > { %p89_p1 = scmp.eq.s32.totalorder %s88_s20, 0  ;;  %p102_p2 = scmp.eq.s32.totalorder %s1406_s16, 1 }
   0x7   : > { %p107_p3 = scmp.ne.s32.totalorder %s1348_s13, %s1344_s12  ;;  %p108_p4 = scmp.eq.s32.totalorder %s1013_s17, 1 }
   0x8   : > { %s1421_s21 = scalar_select %p89_p1, %s1352_s14, %s91_s19  }
   0x9   : > { %p1423_p5 = por %p102_p2, %p101_p0  ;;  %p1427_p6 = por %p108_p4, %p107_p3 }
   0xa   : > { %p1016_p7 = scmp.ge.s32.totalorder %s1356_s15, 1  ;;  %p142_p8 = scmp.lt.s32.totalorder %s1356_s15, 3 }
   0xc   : > { %p143_p9 = pnand %p1016_p7, %p142_p8 }
   0xd   : > { %s1018_s24 = sshll.u32 (!%p143_p9), %s1406_s16, 1  ;;  %vm212_vm0 = vcmask (!%p143_p9), 261120   ;;  %v1536_v46 = vld [vmem:[%s1855_s1] sm:$0xff] (!%p143_p9)  ;;  %v1541_v47 = vld [vmem:[%s1855_s1 + $0x8] sm:$0xff] (!%p143_p9)  ;;  %v1358_v54 = vmov (!%p143_p9), 0.0   ;;  %vm450_vm1 = vcmask (!%p143_p9), 130048  }
   0xe   : > { %146 = sbr.rel (%p143_p9) target bundleno = 1562 (0x61a), region = 32  ;;  %p168_p10 = scmp.lt.s32.totalorder (!%p143_p9), %s1018_s24, 3  ;;  %v317_v50 = vmul.f32 (!%p143_p9), 200.0, %v1536_v46  ;;  %v318_v51 = vmul.f32 (!%p143_p9), 200.0, %v1541_v47  ;;  %1090 = vmatprep.subr.bf16.mxu1 (!%p143_p9), %v1358_v54  ;;  %vm1360_vm2 = vmmov (!%p143_p9), 0   ;;  %vm651_vm3 = vcmask (!%p143_p9), 523264  }
   0xf   : > { %1098 = vmatprep.mubr.msk.bf16.mxu1 (!%p143_p9), %vm1360_vm2, %v1358_v54  ;;  %s164_s8 = sand.u32 (!%p143_p9), 1, %s1348_s13   ;;  %s1042_s11 = sshll.u32 (!%p143_p9), %s1406_s16, 9 }
  0x10   : > { %v319_v52 = vpack.c.bf16 (!%p143_p9), %v318_v51, %v317_v50  ;;  %s1017_s9 = sshll.u32 (!%p143_p9), %s164_s8, 5  ;;  %s1362_s26 = smov (!%p143_p9), [#allocation2]  }
  0x11   : > { %s166_s10 = scalar_lea.vmem (!%p143_p9), [#allocation2], %s1017_s9  ;;  %s1298_s27 = sshll.u32 (!%p143_p9), %s1362_s26, 4  ;;  %s1299_s27 = int_to_ptr.vmem [resolvable:$false] %s1298_s27 }
  0x12   : > { %1138 = vmatprep.subr.msk.bf16.mxu0 (!%p143_p9), %vm212_vm0, %v319_v52  ;;  %v351_v53 = vsel (!%p143_p9), %vm212_vm0, %v319_v52, 0  ;;  %s951_s17 = sshll.u32 (!%p143_p9), %s166_s10, 4  ;;  %s1809_s17 = int_to_ptr.vmem [resolvable:$true] %s951_s17 }
  0x13   : > { %1073 = vmatpush3.bf16.xpose.msra.mxu0 (!%p143_p9), %v351_v53  ;;  %s1294_s16 = scalar_lea.vmem (!%p143_p9), %s1809_s17, 512  ;;  %p1301_p0 = scmp.lt.s32.totalorder (!%p143_p9), %s1809_s17, %s1299_s27 }
  0x14   : > { %1114 = vmatprep.subr.bf16.mxu0 (!%p143_p9), %v1358_v54  ;;  %p1295_p11 = scmp.ne.s32.totalorder (!%p143_p9), %s1809_s17, %s1294_s16 }
  0x15   : > { %s1865_s24 = smov (!%p168_p10, %s1018_s24), 3 }
  0x16   : > { %s1040_s25 = sshll.u32 %s1865_s24, 6  ;;  %s1807_s24 = scalar_lea.hbm %s1857_s3, %s1042_s11 }
  0x17   : > { %s1437_s28 = scalar_lea.vmem %s1854_s0, %s1040_s25  ;;  %s1813_s25 = scalar_lea.sflag [#allocation3], %s164_s8 }
  0x18   : > { %v1440_v0 = vld [vmem:[%s1437_s28 + $0x10] sm:$0xff]  ;;  %v1443_v1 = vld [vmem:[%s1437_s28] sm:$0xff]  ;;  %v1446_v2 = vld [vmem:[%s1437_s28 + $0x18] sm:$0xff]  ;;  %p1296_p12 = pnand %p1295_p11, %p1423_p5 }
  0x19   : > { %v198_v3 = vmul.f32 %v1440_v0, %v1440_v0  ;;  %v196_v4 = vmul.f32 %v1443_v1, %v1443_v1  ;;  %v199_v5 = vmul.f32 %v1446_v2, %v1446_v2  ;;  %v1455_v6 = vld [vmem:[%s1437_s28 + $0x8] sm:$0xff]  ;;  %v1463_v9 = vld [vmem:[%s1437_s28 + $0x20] sm:$0xff]  ;;  %v1474_v16 = vld [vmem:[%s1437_s28 + $0x38] sm:$0xff] }
  0x1a   : > { %v197_v7 = vmul.f32 %v1455_v6, %v1455_v6  ;;  %v1460_v8 = vld [vmem:[%s1437_s28 + $0x28] sm:$0xff]  ;;  %v200_v15 = vmul.f32 %v1463_v9, %v1463_v9  ;;  %v1477_v17 = vld [vmem:[%s1437_s28 + $0x30] sm:$0xff]  ;;  %v203_v20 = vmul.f32 %v1474_v16, %v1474_v16  ;;  %v1489_v23 = vld [vmem:[%s1437_s28 + $0x40] sm:$0xff]  ;;  %p1297_p13 = pneg %p1296_p12 }
  0x1b   : > { %v219_v10 = vsel %vm212_vm0, %v198_v3, 0.0  ;;  %v213_v11 = vsel %vm212_vm0, %v196_v4, 0.0  ;;  %v222_v12 = vsel %vm212_vm0, %v199_v5, 0.0  ;;  %v201_v14 = vmul.f32 %v1460_v8, %v1460_v8  ;;  %v1486_v22 = vld [vmem:[%s1437_s28 + $0x48] sm:$0xff]  ;;  %v1498_v28 = vld [vmem:[%s1437_s28 + $0x58] sm:$0xff]  ;;  %v1501_v29 = vld [vmem:[%s1437_s28 + $0x50] sm:$0xff] }
  0x1c   : > { %220 = vadd.xlane.f32.xlu1 %v219_v10  ;;  %214 = vadd.xlane.f32.xlu0 %v213_v11  ;;  %v216_v13 = vsel %vm212_vm0, %v197_v7, 0.0  ;;  %v225_v19 = vsel %vm212_vm0, %v200_v15, 0.0  ;;  %v202_v21 = vmul.f32 %v1477_v17, %v1477_v17  ;;  %v234_v24 = vsel %vm212_vm0, %v203_v20, 0.0  ;;  %v1510_v34 = vld [vmem:[%s1437_s28 + $0x68] sm:$0xff]  ;;  %v1513_v35 = vld [vmem:[%s1437_s28 + $0x60] sm:$0xff]  ;;  %v1522_v40 = vld [vmem:[%s1437_s28 + $0x78] sm:$0xff] }
  0x1d   : > { %v228_v18 = vsel %vm212_vm0, %v201_v14, 0.0  ;;  %v205_v26 = vmul.f32 %v1486_v22, %v1486_v22  ;;  %v204_v27 = vmul.f32 %v1489_v23, %v1489_v23  ;;  %v207_v32 = vmul.f32 %v1498_v28, %v1498_v28  ;;  %v1525_v41 = vld [vmem:[%s1437_s28 + $0x70] sm:$0xff]  ;;  %s1300_s28 = scalar_lea.vmem %s1299_s27, 1024 }
  0x1e   : > { %v231_v25 = vsel %vm212_vm0, %v202_v21, 0.0  ;;  %v206_v33 = vmul.f32 %v1501_v29, %v1501_v29  ;;  %v209_v38 = vmul.f32 %v1510_v34, %v1510_v34  ;;  %v208_v39 = vmul.f32 %v1513_v35, %v1513_v35  ;;  %p1302_p1 = scmp.lt.s32.totalorder %s1300_s28, %s1294_s16 }
  0x1f   : > { %v240_v30 = vsel %vm212_vm0, %v205_v26, 0.0  ;;  %v237_v31 = vsel %vm212_vm0, %v204_v27, 0.0  ;;  %v246_v36 = vsel %vm212_vm0, %v207_v32, 0.0  ;;  %v211_v44 = vmul.f32 %v1522_v40, %v1522_v40 }
  0x20   : > { %223 = vadd.xlane.f32.xlu1 %v222_v12  ;;  %217 = vadd.xlane.f32.xlu0 %v216_v13  ;;  %v243_v37 = vsel %vm212_vm0, %v206_v33, 0.0  ;;  %v252_v42 = vsel %vm212_vm0, %v209_v38, 0.0  ;;  %v249_v43 = vsel %vm212_vm0, %v208_v39, 0.0  ;;  %v210_v45 = vmul.f32 %v1525_v41, %v1525_v41  ;;  %p1303_p2 = por %p1302_p1, %p1301_p0 }
  0x21   : > { %v258_v48 = vsel %vm212_vm0, %v211_v44, 0.0 }
  0x22   : > { %v255_v49 = vsel %vm212_vm0, %v210_v45, 0.0  ;;  %p1304_p3 = pnand %p1303_p2, %p1297_p13 }
  0x24   : > { %229 = vadd.xlane.f32.xlu1 %v228_v18  ;;  %226 = vadd.xlane.f32.xlu0 %v225_v19 }
  0x28   : > { %235 = vadd.xlane.f32.xlu1 %v234_v24  ;;  %232 = vadd.xlane.f32.xlu0 %v231_v25 }
  0x2c   : > { %241 = vadd.xlane.f32.xlu1 %v240_v30  ;;  %238 = vadd.xlane.f32.xlu0 %v237_v31 }
  0x30   : > { %247 = vadd.xlane.f32.xlu1 %v246_v36  ;;  %244 = vadd.xlane.f32.xlu0 %v243_v37 }
  0x34   : > { %253 = vadd.xlane.f32.xlu1 %v252_v42  ;;  %250 = vadd.xlane.f32.xlu0 %v249_v43 }
  0x38   : > { %259 = vadd.xlane.f32.xlu1 %v258_v48  ;;  %256 = vadd.xlane.f32.xlu0 %v255_v49 }
  0xa9   : > { %v221_v55 = vpop.xlane.xlu1 %220  ;;  %v215_v56 = vpop.xlane.xlu0 %214 }
  0xaa   : > { %v263_v57 = vmax.f32 %v221_v55, 1e-24  ;;  %v261_v58 = vmax.f32 %v215_v56, 1e-24 }
  0xac   : > { %1186 = vrsqrt.f32 %v263_v57 }
  0xad   : > { %v224_v59 = vpop.xlane.xlu1 %223  ;;  %v218_v60 = vpop.xlane.xlu0 %217  ;;  %1188 = vrsqrt.f32 %v261_v58 }
  0xae   : > { %v264_v61 = vmax.f32 %v224_v59, 1e-24  ;;  %v262_v62 = vmax.f32 %v218_v60, 1e-24 }
  0xb0   : > { %1190 = vrsqrt.f32 %v264_v61 }
  0xb1   : > { %1192 = vrsqrt.f32 %v262_v62  ;;  %v230_v63 = vpop.xlane.xlu1 %229  ;;  %v227_v3 = vpop.xlane.xlu0 %226 }
  0xb2   : > { %v266_v4 = vmax.f32 %v230_v63, 1e-24  ;;  %v265_v5 = vmax.f32 %v227_v3, 1e-24 }
  0xb4   : > { %1194 = vrsqrt.f32 %v266_v4 }
  0xb5   : > { %1196 = vrsqrt.f32 %v265_v5  ;;  %v236_v7 = vpop.xlane.xlu1 %235  ;;  %v233_v10 = vpop.xlane.xlu0 %232 }
  0xb6   : > { %v268_v11 = vmax.f32 %v236_v7, 1e-24  ;;  %v267_v12 = vmax.f32 %v233_v10, 1e-24  ;;  %v1187_v13 = vpop.eup %1186 }
  0xb7   : > { %v1189_v14 = vpop.eup %1188  ;;  %v295_v25 = vmul.f32 %v1187_v13, %v1440_v0 }
  0xb8   : > { %1198 = vrsqrt.f32 %v268_v11  ;;  %v293_v27 = vmul.f32 %v1189_v14, %v1443_v1 }
  0xb9   : > { %1200 = vrsqrt.f32 %v267_v12  ;;  %v242_v15 = vpop.xlane.xlu1 %241  ;;  %v239_v18 = vpop.xlane.xlu0 %238 }
  0xba   : > { %v1191_v19 = vpop.eup %1190  ;;  %v270_v20 = vmax.f32 %v242_v15, 1e-24  ;;  %v269_v21 = vmax.f32 %v239_v18, 1e-24 }
  0xbb   : > { %v1193_v24 = vpop.eup %1192  ;;  %v296_v26 = vmul.f32 %v1191_v19, %v1446_v2 }
  0xbc   : > { %1202 = vrsqrt.f32 %v270_v20  ;;  %v294_v30 = vmul.f32 %v1193_v24, %v1455_v6 }
  0xbd   : > { %1204 = vrsqrt.f32 %v269_v21  ;;  %v248_v31 = vpop.xlane.xlu1 %247  ;;  %v245_v32 = vpop.xlane.xlu0 %244  ;;  %v310_v33 = vpack.c.bf16 %v296_v26, %v295_v25 }
  0xbe   : > { %v1195_v36 = vpop.eup %1194  ;;  %v272_v37 = vmax.f32 %v248_v31, 1e-24  ;;  %v271_v38 = vmax.f32 %v245_v32, 1e-24  ;;  %v309_v39 = vpack.c.bf16 %v294_v30, %v293_v27 }
  0xbf   : > { %v1197_v42 = vpop.eup %1196  ;;  %v298_v43 = vmul.f32 %v1195_v36, %v1460_v8 }
  0xc0   : > { %1206 = vrsqrt.f32 %v272_v37  ;;  %1074 = vmatprep.mubr.msk.bf16.mxu0 %vm212_vm0, %v309_v39  ;;  %1091 = vmatpush3.bf16.msra.mxu1 %v309_v39  ;;  %v297_v0 = vmul.f32 %v1197_v42, %v1463_v9 }
  0xc1   : > { %1208 = vrsqrt.f32 %v271_v38  ;;  %1075 = vmatmul.mubr.msk.bf16.vlgmr.msra.gmra.mrb[0].mxu0 %vm212_vm0, %v310_v33  ;;  %v254_v1 = vpop.xlane.xlu1 %253  ;;  %1092 = vmatprep.subr.bf16.mxu1 %v1358_v54  ;;  %v251_v2 = vpop.xlane.xlu0 %250 }
  0xc2   : > { %v1199_v6 = vpop.eup %1198  ;;  %v274_v44 = vmax.f32 %v254_v1, 1e-24  ;;  %v273_v45 = vmax.f32 %v251_v2, 1e-24  ;;  %v311_v48 = vpack.c.bf16 %v298_v43, %v297_v0 }
  0xc3   : > { %v1201_v49 = vpop.eup %1200  ;;  %v300_v8 = vmul.f32 %v1199_v6, %v1474_v16 }
  0xc4   : > { %1210 = vrsqrt.f32 %v274_v44  ;;  %1093 = vmatpush3.bf16.msra.mxu1 %v310_v33  ;;  %1078 = vmatprep.mubr.msk.bf16.mxu0 %vm212_vm0, %v311_v48  ;;  %v299_v9 = vmul.f32 %v1201_v49, %v1477_v17 }
  0xc5   : > { %1212 = vrsqrt.f32 %v273_v45  ;;  %v260_v50 = vpop.xlane.xlu1 %259  ;;  %1094 = vmatprep.subr.bf16.mxu1 %v1358_v54  ;;  %v257_v51 = vpop.xlane.xlu0 %256 }
  0xc6   : > { %v1203_v52 = vpop.eup %1202  ;;  %v276_v53 = vmax.f32 %v260_v50, 1e-24  ;;  %v275_v55 = vmax.f32 %v257_v51, 1e-24  ;;  %v312_v56 = vpack.c.bf16 %v300_v8, %v299_v9 }
  0xc7   : > { %v1205_v57 = vpop.eup %1204  ;;  %v302_v58 = vmul.f32 %v1203_v52, %v1486_v22 }
  0xc8   : > { %1214 = vrsqrt.f32 %v276_v53  ;;  %1095 = vmatpush3.bf16.msra.mxu1 %v311_v48  ;;  %v301_v16 = vmul.f32 %v1205_v57, %v1489_v23 }
  0xc9   : > { %1216 = vrsqrt.f32 %v275_v55  ;;  %1079 = vmatmul.mubr.msk.bf16.gmra.mrb[4].mxu0 %vm212_vm0, %v312_v56  ;;  %1096 = vmatprep.subr.bf16.mxu1 %v1358_v54 }
  0xca   : > { %v1207_v17 = vpop.eup %1206  ;;  %v1568_v59 = vpack.c.bf16 %v302_v58, %v301_v16 }
  0xcb   : > { %v1209_v60 = vpop.eup %1208  ;;  %v304_v61 = vmul.f32 %v1207_v17, %v1498_v28 }
  0xcc   : > { %1097 = vmatpush3.bf16.msra.mxu1 %v312_v56  ;;  %1082 = vmatprep.mubr.msk.bf16.mxu0 %vm212_vm0, %v1568_v59  ;;  %v303_v22 = vmul.f32 %v1209_v60, %v1501_v29 }
  0xcd   : > { %1102 = vmatprep.subr.bf16.mxu1 %v1358_v54 }
  0xce   : > { %v1211_v23 = vpop.eup %1210  ;;  %v1575_v62 = vpack.c.bf16 %v304_v61, %v303_v22 }
  0xcf   : > { %v1213_v63 = vpop.eup %1212  ;;  %v306_v3 = vmul.f32 %v1211_v23, %v1510_v34  ;;  %v1021_v34 = vld [vmem:[%s1856_s2] ss:$0 sm:$0xff] }
  0xd0   : > { %v305_v4 = vmul.f32 %v1213_v63, %v1513_v35 }
  0xd1   : > { %1083 = vmatmul.mubr.msk.bf16.gmra.mrb[8].mxu0 %vm212_vm0, %v1575_v62 }
  0xd2   : > { %v1215_v28 = vpop.eup %1214  ;;  %v1581_v5 = vpack.c.bf16 %v306_v3, %v305_v4 }
  0xd3   : > { %v1217_v7 = vpop.eup %1216  ;;  %v308_v10 = vmul.f32 %v1215_v28, %v1522_v40 }
  0xd4   : > { %1086 = vmatprep.mubr.msk.bf16.mxu0 %vm212_vm0, %v1581_v5  ;;  %v307_v29 = vmul.f32 %v1217_v7, %v1525_v41 }
  0xd6   : > { %v1587_v11 = vpack.c.bf16 %v308_v10, %v307_v29 }
  0xd9   : > { %1087 = vmatmul.mubr.msk.bf16.gmra.mrb[12].mxu0 %vm212_vm0, %v1587_v11 }
  0xda   : > { %1122 = vmatprep.mubr.msk.bf16.mxu0 %vm1360_vm2, %v1358_v54 }
 0x194   : > { %v1076_v35 = vpop.f32.mrb[0].mxu0 }
 0x195   : > { %v1594_v12 = vadd.f32 %v1076_v35, %v1021_v34  ;;  %v387_v13 = vpop.f32.mrb[1].mxu0 }
 0x196   : > { %v1077_v40 = vpop.f32.mrb[2].mxu0  ;;  %v1596_v14 = vadd.f32 %v1021_v34, %v387_v13 }
 0x197   : > { %v1598_v15 = vadd.f32 %v1077_v40, %v1021_v34  ;;  %v390_v41 = vpop.f32.mrb[3].mxu0  ;;  %v457_v18 = vsel %vm450_vm1, %v1594_v12, -inf }
 0x198   : > { %458 = vmax.xlane.f32.xlu0 %v457_v18  ;;  %v1602_v19 = vadd.f32 %v1021_v34, %v390_v41  ;;  %v451_v21 = vsel %vm450_vm1, %v1596_v14, -inf }
 0x199   : > { %v460_v20 = vsel %vm450_vm1, %v1598_v15, -inf }
 0x19a   : > { %461 = vmax.xlane.f32.xlu1 %v460_v20  ;;  %v454_v26 = vsel %vm450_vm1, %v1602_v19, -inf }
 0x19c   : > { %452 = vmax.xlane.f32.xlu0 %v451_v21  ;;  %v1080_v24 = vpop.f32.mrb[4].mxu0 }
 0x19d   : > { %v403_v25 = vpop.f32.mrb[5].mxu0  ;;  %v1612_v32 = vadd.f32 %v1080_v24, %v1021_v34 }
 0x19e   : > { %v1610_v27 = vadd.f32 %v1021_v34, %v403_v25  ;;  %455 = vmax.xlane.f32.xlu1 %v454_v26  ;;  %v1081_v30 = vpop.f32.mrb[6].mxu0 }
 0x19f   : > { %v406_v31 = vpop.f32.mrb[7].mxu0  ;;  %v1618_v37 = vadd.f32 %v1081_v30, %v1021_v34  ;;  %v469_v42 = vsel %vm450_vm1, %v1612_v32, -inf }
 0x1a0   : > { %v1614_v33 = vadd.f32 %v1021_v34, %v406_v31  ;;  %v463_v36 = vsel %vm450_vm1, %v1610_v27, -inf }
 0x1a1   : > { %464 = vmax.xlane.f32.xlu0 %v463_v36  ;;  %v472_v2 = vsel %vm450_vm1, %v1618_v37, -inf }
 0x1a2   : > { %v466_v38 = vsel %vm450_vm1, %v1614_v33, -inf }
 0x1a3   : > { %467 = vmax.xlane.f32.xlu1 %v466_v38 }
 0x1a4   : > { %v1084_v39 = vpop.f32.mrb[8].mxu0 }
 0x1a5   : > { %v1624_v43 = vadd.f32 %v1084_v39, %v1021_v34  ;;  %470 = vmax.xlane.f32.xlu0 %v469_v42  ;;  %v419_v0 = vpop.f32.mrb[9].mxu0 }
 0x1a6   : > { %v1085_v1 = vpop.f32.mrb[10].mxu0  ;;  %v1632_v48 = vadd.f32 %v1021_v34, %v419_v0 }
 0x1a7   : > { %v1628_v6 = vadd.f32 %v1085_v1, %v1021_v34  ;;  %473 = vmax.xlane.f32.xlu1 %v472_v2  ;;  %v422_v44 = vpop.f32.mrb[11].mxu0  ;;  %v481_v45 = vsel %vm450_vm1, %v1624_v43, -inf }
 0x1a8   : > { %v1636_v8 = vadd.f32 %v1021_v34, %v422_v44  ;;  %v475_v50 = vsel %vm450_vm1, %v1632_v48, -inf }
 0x1a9   : > { %482 = vmax.xlane.f32.xlu0 %v481_v45  ;;  %v484_v49 = vsel %vm450_vm1, %v1628_v6, -inf }
 0x1aa   : > { %v478_v56 = vsel %vm450_vm1, %v1636_v8, -inf }
 0x1ab   : > { %485 = vmax.xlane.f32.xlu1 %v484_v49 }
 0x1ac   : > { %v1088_v9 = vpop.f32.mrb[12].mxu0 }
 0x1ad   : > { %476 = vmax.xlane.f32.xlu0 %v475_v50  ;;  %v435_v51 = vpop.f32.mrb[13].mxu0  ;;  %v1640_v52 = vadd.f32 %v1088_v9, %v1021_v34 }
 0x1ae   : > { %v1642_v53 = vadd.f32 %v1021_v34, %v435_v51  ;;  %v1089_v55 = vpop.f32.mrb[14].mxu0 }
 0x1af   : > { %479 = vmax.xlane.f32.xlu1 %v478_v56  ;;  %v438_v57 = vpop.f32.mrb[15].mxu0  ;;  %v1650_v17 = vadd.f32 %v1089_v55, %v1021_v34  ;;  %v493_v61 = vsel %vm450_vm1, %v1640_v52, -inf }
 0x1b0   : > { %v1646_v58 = vadd.f32 %v1021_v34, %v438_v57  ;;  %v487_v16 = vsel %vm450_vm1, %v1642_v53, -inf }
 0x1b1   : > { %488 = vmax.xlane.f32.xlu0 %v487_v16  ;;  %v496_v22 = vsel %vm450_vm1, %v1650_v17, -inf }
 0x1b2   : > { %v490_v60 = vsel %vm450_vm1, %v1646_v58, -inf }
 0x1b3   : > { %491 = vmax.xlane.f32.xlu1 %v490_v60 }
 0x1b5   : > { %494 = vmax.xlane.f32.xlu0 %v493_v61 }
 0x1b7   : > { %497 = vmax.xlane.f32.xlu1 %v496_v22 }
 0x225   : > { %v459_v23 = vpop.xlane.xlu0 %458 }
 0x226   : > { %v501_v63 = vsub.f32 %v1594_v12, %v459_v23 }
 0x227   : > { %v462_v3 = vpop.xlane.xlu1 %461 }
 0x228   : > { %v519_v4 = vmul.f32 1.442695, %v501_v63  ;;  %v502_v28 = vsub.f32 %v1598_v15, %v462_v3 }
 0x229   : > { %v453_v7 = vpop.xlane.xlu0 %452 }
 0x22a   : > { %1218 = vpow2.f32 %v519_v4  ;;  %v521_v10 = vmul.f32 1.442695, %v502_v28  ;;  %v499_v29 = vsub.f32 %v1596_v14, %v453_v7 }
 0x22b   : > { %v456_v34 = vpop.xlane.xlu1 %455 }
 0x22c   : > { %1220 = vpow2.f32 %v521_v10  ;;  %v515_v35 = vmul.f32 1.442695, %v499_v29  ;;  %v500_v13 = vsub.f32 %v1602_v19, %v456_v34 }
 0x22e   : > { %1222 = vpow2.f32 %v515_v35  ;;  %v517_v40 = vmul.f32 1.442695, %v500_v13  ;;  %v465_v41 = vpop.xlane.xlu0 %464 }
 0x22f   : > { %v503_v18 = vsub.f32 %v1610_v27, %v465_v41 }
 0x230   : > { %1224 = vpow2.f32 %v517_v40  ;;  %v468_v12 = vpop.xlane.xlu1 %467 }
 0x231   : > { %v523_v20 = vmul.f32 1.442695, %v503_v18  ;;  %v504_v15 = vsub.f32 %v1614_v33, %v468_v12 }
 0x232   : > { %v471_v21 = vpop.xlane.xlu0 %470 }
 0x233   : > { %1226 = vpow2.f32 %v523_v20  ;;  %v525_v24 = vmul.f32 1.442695, %v504_v15  ;;  %v505_v14 = vsub.f32 %v1612_v32, %v471_v21 }
 0x234   : > { %v1665_v25 = vpop.eup %1218  ;;  %v474_v26 = vpop.xlane.xlu1 %473 }
 0x235   : > { %1228 = vpow2.f32 %v525_v24  ;;  %v527_v19 = vmul.f32 1.442695, %v505_v14  ;;  %v506_v30 = vsub.f32 %v1618_v37, %v474_v26  ;;  %v553_v27 = vsel %vm450_vm1, %v1665_v25, 0.0 }
 0x236   : > { %v1670_v31 = vpop.eup %1220  ;;  %554 = vadd.xlane.f32.xlu0 %v553_v27  ;;  %v483_v36 = vpop.xlane.xlu0 %482  ;;  %v1359_v27 = vmov 1065369472  }
 0x237   : > { %1230 = vpow2.f32 %v527_v19  ;;  %v529_v33 = vmul.f32 1.442695, %v506_v30  ;;  %v509_v38 = vsub.f32 %v1624_v43, %v483_v36  ;;  %v556_v32 = vsel %vm450_vm1, %v1670_v31, 0.0  ;;  %1115 = vmatpush3.bf16.msra.mxu0 %v1359_v27 }
 0x238   : > { %v1675_v39 = vpop.eup %1222  ;;  %v486_v42 = vpop.xlane.xlu1 %485  ;;  %557 = vadd.xlane.f32.xlu1 %v556_v32  ;;  %1116 = vmatprep.subr.bf16.mxu0 %v1358_v54 }
 0x239   : > { %1232 = vpow2.f32 %v529_v33  ;;  %v535_v37 = vmul.f32 1.442695, %v509_v38  ;;  %v510_v0 = vsub.f32 %v1628_v6, %v486_v42  ;;  %v547_v1 = vsel %vm450_vm1, %v1675_v39, 0.0 }
 0x23a   : > { %v1680_v2 = vpop.eup %1224  ;;  %548 = vadd.xlane.f32.xlu0 %v547_v1  ;;  %v477_v44 = vpop.xlane.xlu0 %476 }
 0x23b   : > { %1234 = vpow2.f32 %v535_v37  ;;  %v537_v43 = vmul.f32 1.442695, %v510_v0  ;;  %v507_v45 = vsub.f32 %v1632_v48, %v477_v44  ;;  %v550_v49 = vsel %vm450_vm1, %v1680_v2, 0.0  ;;  %1117 = vmatpush3.bf16.msra.mxu0 %v1359_v27 }
 0x23c   : > { %v480_v9 = vpop.xlane.xlu1 %479  ;;  %551 = vadd.xlane.f32.xlu1 %v550_v49  ;;  %1118 = vmatprep.subr.bf16.mxu0 %v1358_v54 }
 0x23d   : > { %v1685_v50 = vpop.eup %1226  ;;  %1236 = vpow2.f32 %v537_v43  ;;  %v531_v6 = vmul.f32 1.442695, %v507_v45  ;;  %v508_v51 = vsub.f32 %v1636_v8, %v480_v9 }
 0x23e   : > { %v489_v55 = vpop.xlane.xlu0 %488  ;;  %v559_v56 = vsel %vm450_vm1, %v1685_v50, 0.0 }
 0x23f   : > { %v1690_v57 = vpop.eup %1228  ;;  %1238 = vpow2.f32 %v531_v6  ;;  %v533_v16 = vmul.f32 1.442695, %v508_v51  ;;  %v511_v48 = vsub.f32 %v1642_v53, %v489_v55  ;;  %560 = vadd.xlane.f32.xlu0 %v559_v56  ;;  %1119 = vmatpush3.bf16.msra.mxu0 %v1359_v27 }
 0x240   : > { %v492_v60 = vpop.xlane.xlu1 %491  ;;  %v562_v61 = vsel %vm450_vm1, %v1690_v57, 0.0  ;;  %1120 = vmatprep.subr.bf16.mxu0 %v1358_v54 }
 0x241   : > { %v1695_v22 = vpop.eup %1230  ;;  %1240 = vpow2.f32 %v533_v16  ;;  %v539_v23 = vmul.f32 1.442695, %v511_v48  ;;  %v512_v8 = vsub.f32 %v1646_v58, %v492_v60  ;;  %563 = vadd.xlane.f32.xlu1 %v562_v61 }
 0x242   : > { %v495_v63 = vpop.xlane.xlu0 %494  ;;  %v565_v3 = vsel %vm450_vm1, %v1695_v22, 0.0 }
 0x243   : > { %v1700_v4 = vpop.eup %1232  ;;  %1242 = vpow2.f32 %v539_v23  ;;  %v541_v53 = vmul.f32 1.442695, %v512_v8  ;;  %v513_v28 = vsub.f32 %v1640_v52, %v495_v63  ;;  %566 = vadd.xlane.f32.xlu0 %v565_v3  ;;  %1121 = vmatpush3.bf16.msra.mxu0 %v1359_v27 }
 0x244   : > { %v498_v7 = vpop.xlane.xlu1 %497  ;;  %v568_v10 = vsel %vm450_vm1, %v1700_v4, 0.0 }
 0x245   : > { %v1705_v29 = vpop.eup %1234  ;;  %1244 = vpow2.f32 %v541_v53  ;;  %v543_v58 = vmul.f32 1.442695, %v513_v28  ;;  %v514_v34 = vsub.f32 %v1650_v17, %v498_v7  ;;  %569 = vadd.xlane.f32.xlu1 %v568_v10 }
 0x246   : > { %v577_v35 = vsel %vm450_vm1, %v1705_v29, 0.0 }
 0x247   : > { %v1710_v13 = vpop.eup %1236  ;;  %1246 = vpow2.f32 %v543_v58  ;;  %v545_v40 = vmul.f32 1.442695, %v514_v34  ;;  %578 = vadd.xlane.f32.xlu0 %v577_v35 }
 0x248   : > { %v580_v52 = vsel %vm450_vm1, %v1710_v13, 0.0 }
 0x249   : > { %v1714_v41 = vpop.eup %1238  ;;  %1248 = vpow2.f32 %v545_v40  ;;  %581 = vadd.xlane.f32.xlu1 %v580_v52 }
 0x24a   : > { %v571_v18 = vsel %vm450_vm1, %v1714_v41, 0.0 }
 0x24b   : > { %v1718_v17 = vpop.eup %1240  ;;  %572 = vadd.xlane.f32.xlu0 %v571_v18 }
 0x24c   : > { %v574_v12 = vsel %vm450_vm1, %v1718_v17, 0.0 }
 0x24d   : > { %v1722_v20 = vpop.eup %1242  ;;  %575 = vadd.xlane.f32.xlu1 %v574_v12 }
 0x24e   : > { %v583_v15 = vsel %vm450_vm1, %v1722_v20, 0.0 }
 0x24f   : > { %v1726_v21 = vpop.eup %1244  ;;  %584 = vadd.xlane.f32.xlu0 %v583_v15 }
 0x250   : > { %v586_v24 = vsel %vm450_vm1, %v1726_v21, 0.0 }
 0x251   : > { %v1730_v14 = vpop.eup %1246  ;;  %587 = vadd.xlane.f32.xlu1 %v586_v24 }
 0x252   : > { %v589_v26 = vsel %vm450_vm1, %v1730_v14, 0.0 }
 0x253   : > { %v1734_v19 = vpop.eup %1248  ;;  %590 = vadd.xlane.f32.xlu0 %v589_v26 }
 0x254   : > { %v592_v30 = vsel %vm450_vm1, %v1734_v19, 0.0 }
 0x255   : > { %593 = vadd.xlane.f32.xlu1 %v592_v30 }
 0x2c3   : > { %v555_v36 = vpop.xlane.xlu0 %554 }
 0x2c5   : > { %v558_v33 = vpop.xlane.xlu1 %557 }
 0x2c7   : > { %v549_v38 = vpop.xlane.xlu0 %548 }
 0x2c8   : > { %1250 = vrcp.f32 %v549_v38 }
 0x2c9   : > { %1252 = vrcp.f32 %v558_v33  ;;  %v552_v32 = vpop.xlane.xlu1 %551 }
 0x2ca   : > { %1254 = vrcp.f32 %v552_v32  ;;  %v1361_v32 = vmov 0  }
 0x2cb   : > { %1256 = vrcp.f32 %v555_v36 }
 0x2cc   : > { %v561_v42 = vpop.xlane.xlu0 %560 }
 0x2ce   : > { %v564_v37 = vpop.xlane.xlu1 %563 }
 0x2cf   : > { %1258 = vrcp.f32 %v564_v37 }
 0x2d0   : > { %1260 = vrcp.f32 %v561_v42  ;;  %v567_v0 = vpop.xlane.xlu0 %566 }
 0x2d2   : > { %v1251_v1 = vpop.eup %1250  ;;  %v570_v44 = vpop.xlane.xlu1 %569 }
 0x2d3   : > { %v1253_v43 = vpop.eup %1252  ;;  %1262 = vrcp.f32 %v570_v44  ;;  %v611_v9 = vmul.f32 %v1251_v1, %v1675_v39 }
 0x2d4   : > { %v1255_v45 = vpop.eup %1254  ;;  %1264 = vrcp.f32 %v567_v0  ;;  %v579_v49 = vpop.xlane.xlu0 %578  ;;  %v614_v16 = vmul.f32 %v1253_v43, %v1670_v31 }
 0x2d5   : > { %v612_v6 = vmul.f32 %v1255_v45, %v1680_v2  ;;  %v1257_v51 = vpop.eup %1256 }
 0x2d6   : > { %v582_v55 = vpop.xlane.xlu1 %581  ;;  %v613_v61 = vmul.f32 %v1257_v51, %v1665_v25 }
 0x2d7   : > { %v627_v56 = vpack.c.bf16 %v612_v6, %v611_v9 }
 0x2d8   : > { %v573_v48 = vpop.xlane.xlu0 %572  ;;  %v628_v63 = vpack.c.bf16 %v614_v16, %v613_v61 }
 0x2d9   : > { %v1259_v60 = vpop.eup %1258  ;;  %1266 = vrcp.f32 %v573_v48  ;;  %635 = vxpose.xlu0.c.b16.start [1/4] (short) (narrow) %v627_v56, 16 }
 0x2da   : > { %v1261_v23 = vpop.eup %1260  ;;  %1268 = vrcp.f32 %v582_v55  ;;  %v576_v8 = vpop.xlane.xlu1 %575  ;;  %v616_v39 = vmul.f32 %v1259_v60, %v1690_v57 }
 0x2db   : > { %1270 = vrcp.f32 %v576_v8  ;;  %v615_v53 = vmul.f32 %v1261_v23, %v1685_v50 }
 0x2dc   : > { %v585_v3 = vpop.xlane.xlu0 %584  ;;  %1272 = vrcp.f32 %v579_v49 }
 0x2dd   : > { %v1263_v2 = vpop.eup %1262  ;;  %636 = vxpose.xlu0.c.b16.cont [2/4] (short) (narrow) %v628_v63, 16  ;;  %v629_v7 = vpack.c.bf16 %v616_v39, %v615_v53 }
 0x2de   : > { %v1265_v31 = vpop.eup %1264  ;;  %v588_v28 = vpop.xlane.xlu1 %587  ;;  %v618_v10 = vmul.f32 %v1263_v2, %v1700_v4 }
 0x2df   : > { %1274 = vrcp.f32 %v588_v28  ;;  %v617_v25 = vmul.f32 %v1265_v31, %v1695_v22 }
 0x2e0   : > { %1276 = vrcp.f32 %v585_v3  ;;  %v591_v58 = vpop.xlane.xlu0 %590 }
 0x2e1   : > { %637 = vxpose.xlu0.c.b16.cont [3/4] (short) (narrow) %v629_v7, 16  ;;  %v630_v57 = vpack.c.bf16 %v618_v10, %v617_v25 }
 0x2e2   : > { %v594_v34 = vpop.xlane.xlu1 %593 }
 0x2e3   : > { %v1267_v35 = vpop.eup %1266  ;;  %1278 = vrcp.f32 %v594_v34 }
 0x2e4   : > { %v1269_v40 = vpop.eup %1268  ;;  %1280 = vrcp.f32 %v591_v58  ;;  %v619_v50 = vmul.f32 %v1267_v35, %v1714_v41 }
 0x2e5   : > { %v1271_v52 = vpop.eup %1270  ;;  %638 = vxpose.xlu0.c.b16.end [4/4] (short) (narrow) %v630_v57, 16  ;;  %v622_v4 = vmul.f32 %v1269_v40, %v1710_v13 }
 0x2e6   : > { %v620_v18 = vmul.f32 %v1271_v52, %v1718_v17  ;;  %v1273_v12 = vpop.eup %1272 }
 0x2e7   : > { %v621_v22 = vmul.f32 %v1273_v12, %v1705_v29 }
 0x2e8   : > { %v631_v15 = vpack.c.bf16 %v620_v18, %v619_v50 }
 0x2e9   : > { %v1275_v24 = vpop.eup %1274  ;;  %v632_v30 = vpack.c.bf16 %v622_v4, %v621_v22 }
 0x2ea   : > { %696 = vxpose.xlu1.c.b16.start [1/4] (short) (narrow) %v631_v15, 16  ;;  %v1277_v26 = vpop.eup %1276  ;;  %v624_v36 = vmul.f32 %v1275_v24, %v1726_v21 }
 0x2eb   : > { %v623_v38 = vmul.f32 %v1277_v26, %v1722_v20 }
 0x2ed   : > { %v1279_v33 = vpop.eup %1278  ;;  %v633_v17 = vpack.c.bf16 %v624_v36, %v623_v38 }
 0x2ee   : > { %697 = vxpose.xlu1.c.b16.cont [2/4] (short) (narrow) %v632_v30, 16  ;;  %1184 = vset.pattern.permute.xlu0 %v1361_v32  ;;  %v1281_v41 = vpop.eup %1280  ;;  %v626_v42 = vmul.f32 %v1279_v33, %v1734_v19 }
 0x2ef   : > { %v625_v13 = vmul.f32 %v1281_v41, %v1730_v14 }
 0x2f1   : > { %v634_v37 = vpack.c.bf16 %v626_v42, %v625_v13 }
 0x2f2   : > { %698 = vxpose.xlu1.c.b16.cont [3/4] (short) (narrow) %v633_v17, 16 }
 0x2f6   : > { %699 = vxpose.xlu1.c.b16.end [4/4] (short) (narrow) %v634_v37, 16 }
 0x2fa   : > { %1185 = vset.pattern.permute.xlu1 %v1361_v32 }
 0x33f   : > { %v643_v29 = vpop.trf.xlu0 }
 0x340   : > { %1099 = vmatmul.mubr.msk.bf16.vlgmr.msra.gmra.mrb[0].mxu1 %vm651_vm3, %v643_v29  ;;  %1123 = vmatmul.mubr.msk.bf16.vlgmr.msra.gmra.mrb[16].mxu0 %vm651_vm3, %v643_v29 }
 0x341   : > { %1103 = vmatpush3.bf16.msra.mxu1 %v1568_v59  ;;  %1110 = vmatprep.mubr.msk.bf16.mxu1 %vm1360_vm2, %v1358_v54 }
 0x342   : > { %1104 = vmatprep.subr.bf16.mxu1 %v1358_v54 }
 0x345   : > { %1105 = vmatpush3.bf16.msra.mxu1 %v1575_v62 }
 0x346   : > { %1106 = vmatprep.subr.bf16.mxu1 %v1358_v54 }
 0x349   : > { %1107 = vmatpush3.bf16.msra.mxu1 %v1581_v5 }
 0x34a   : > { %1108 = vmatprep.subr.bf16.mxu1 %v1358_v54 }
 0x34d   : > { %1109 = vmatpush3.bf16.msra.mxu1 %v1587_v11 }
 0x34e   : > { %1126 = vmatprep.subr.bf16.mxu1 %v1358_v54 }
 0x350   : > { %v704_v20 = vpop.trf.xlu1 }
 0x351   : > { %1111 = vmatmul.mubr.msk.bf16.vlgmr.msra.gmra.mrb[4].mxu1 %vm651_vm3, %v704_v20 }
 0x352   : > { %1127 = vmatpush3.bf16.msra.mxu1 %v1359_v27  ;;  %1134 = vmatprep.mubr.msk.bf16.mxu1 %vm1360_vm2, %v1358_v54 }
 0x353   : > { %1128 = vmatprep.subr.bf16.mxu1 %v1358_v54 }
 0x356   : > { %1129 = vmatpush3.bf16.msra.mxu1 %v1359_v27 }
 0x357   : > { %1130 = vmatprep.subr.bf16.mxu1 %v1358_v54 }
 0x35a   : > { %1131 = vmatpush3.bf16.msra.mxu1 %v1359_v27 }
 0x35b   : > { %1132 = vmatprep.subr.bf16.mxu1 %v1358_v54 }
 0x35e   : > { %1133 = vmatpush3.bf16.msra.mxu1 %v1359_v27 }
 0x361   : > { %1135 = vmatmul.mubr.msk.bf16.vlgmr.msra.gmra.mrb[8].mxu1 %vm651_vm3, %v704_v20 }
 0x413   : > { %v689_v59 = vpop.f32.mrb[0].mxu1  ;;  %v790_v62 = vpop.f32.mrb[16].mxu0 }
 0x414   : > { %840 = vperm.xlu0 %1184, %v790_v62   ;;  %v1100_v5 = vpop.f32.mrb[1].mxu1  ;;  %v1124_v11 = vpop.f32.mrb[17].mxu0 }
 0x415   : > { %v692_v21 = vpop.f32.mrb[2].mxu1  ;;  %v793_v14 = vpop.f32.mrb[18].mxu0 }
 0x416   : > { %845 = vperm.xlu1 %1185, %v793_v14   ;;  %v1101_v19 = vpop.f32.mrb[3].mxu1  ;;  %v1125_v0 = vpop.f32.mrb[19].mxu0 }
 0x424   : > { %v749_v1 = vpop.f32.mrb[4].mxu1 }
 0x425   : > { %v1112_v44 = vpop.f32.mrb[5].mxu1 }
 0x426   : > { %v752_v43 = vpop.f32.mrb[6].mxu1 }
 0x427   : > { %v1113_v45 = vpop.f32.mrb[7].mxu1 }
 0x434   : > { %v831_v49 = vpop.f32.mrb[8].mxu1 }
 0x435   : > { %850 = vperm.xlu1 %1185, %v831_v49   ;;  %v1136_v54 = vpop.f32.mrb[9].mxu1 }
 0x436   : > { %v834_v27 = vpop.f32.mrb[10].mxu1 }
 0x437   : > { %v1137_v9 = vpop.f32.mrb[11].mxu1 }
 0x439   : > { %855 = vperm.xlu1 %1185, %v834_v27  }
 0x493   : > { %v841_v6 = vpop.permute.xlu0 %840 }
 0x494   : > { %v858_v51 = vmul.f32 %v841_v6, %v1536_v46 }
 0x495   : > { %v846_v55 = vpop.permute.xlu1 %845 }
 0x496   : > { %v862_v56 = vsub.f32 %v689_v59, %v858_v51  ;;  %v859_v16 = vmul.f32 %v846_v55, %v1541_v47 }
 0x498   : > { %v863_v48 = vsub.f32 %v692_v21, %v859_v16  ;;  %v866_v60 = vmul.f32 %v862_v56, %v862_v56 }
 0x49a   : > { %v870_v61 = vsel %vm212_vm0, %v866_v60, 0.0  ;;  %v867_v23 = vmul.f32 %v863_v48, %v863_v48 }
 0x49b   : > { %871 = vadd.xlane.f32.xlu0 %v870_v61 }
 0x49c   : > { %v873_v8 = vsel %vm212_vm0, %v867_v23, 0.0 }
 0x49d   : > { %874 = vadd.xlane.f32.xlu1 %v873_v8 }
 0x4b4   : > { %v851_v63 = vpop.permute.xlu1 %850 }
 0x4b5   : > { %v860_v39 = vmul.f32 %v851_v63, %v1536_v46 }
 0x4b7   : > { %v864_v3 = vsub.f32 %v749_v1, %v860_v39 }
 0x4b8   : > { %v856_v2 = vpop.permute.xlu1 %855 }
 0x4b9   : > { %v861_v53 = vmul.f32 %v856_v2, %v1541_v47  ;;  %v868_v31 = vmul.f32 %v864_v3, %v864_v3 }
 0x4bb   : > { %v865_v28 = vsub.f32 %v752_v43, %v861_v53  ;;  %v876_v7 = vsel %vm212_vm0, %v868_v31, 0.0 }
 0x4bc   : > { %877 = vadd.xlane.f32.xlu0 %v876_v7 }
 0x4bd   : > { %v869_v10 = vmul.f32 %v865_v28, %v865_v28 }
 0x4bf   : > { %v879_v25 = vsel %vm212_vm0, %v869_v10, 0.0 }
 0x4c0   : > { %880 = vadd.xlane.f32.xlu0 %v879_v25 }
 0x528   : > { %v872_v58 = vpop.xlane.xlu0 %871 }
 0x529   : > { %v882_v34 = vmax.f32 %v872_v58, 1e-24 }
 0x52a   : > { %v875_v35 = vpop.xlane.xlu1 %874 }
 0x52b   : > { %1282 = vrsqrt.f32 %v882_v34  ;;  %v883_v57 = vmax.f32 %v875_v35, 1e-24 }
 0x52d   : > { %1284 = vrsqrt.f32 %v883_v57 }
 0x535   : > { %v1283_v46 = vpop.eup %1282 }
 0x536   : > { %v890_v40 = vmul.f32 %v1283_v46, %v862_v56 }
 0x537   : > { %v1285_v52 = vpop.eup %1284 }
 0x538   : > { %v894_v50 = vmul.f32 %v890_v40, %v890_v40  ;;  %v891_v47 = vmul.f32 %v1285_v52, %v863_v48 }
 0x53a   : > { %v898_v18 = vsel %vm212_vm0, %v894_v50, 0.0  ;;  %v895_v12 = vmul.f32 %v891_v47, %v891_v47 }
 0x53b   : > { %899 = vadd.xlane.f32.xlu0 %v898_v18 }
 0x53c   : > { %v901_v15 = vsel %vm212_vm0, %v895_v12, 0.0 }
 0x53d   : > { %902 = vadd.xlane.f32.xlu1 %v901_v15 }
 0x549   : > { %v878_v4 = vpop.xlane.xlu0 %877 }
 0x54a   : > { %v884_v24 = vmax.f32 %v878_v4, 1e-24 }
 0x54c   : > { %1286 = vrsqrt.f32 %v884_v24 }
 0x54d   : > { %v881_v22 = vpop.xlane.xlu0 %880 }
 0x54e   : > { %v885_v26 = vmax.f32 %v881_v22, 1e-24 }
 0x550   : > { %1288 = vrsqrt.f32 %v885_v26 }
 0x556   : > { %v1287_v30 = vpop.eup %1286 }
 0x557   : > { %v892_v36 = vmul.f32 %v1287_v30, %v864_v3 }
 0x559   : > { %v896_v33 = vmul.f32 %v892_v36, %v892_v36 }
 0x55a   : > { %v1289_v38 = vpop.eup %1288 }
 0x55b   : > { %v904_v32 = vsel %vm212_vm0, %v896_v33, 0.0  ;;  %v893_v41 = vmul.f32 %v1289_v38, %v865_v28 }
 0x55c   : > { %905 = vadd.xlane.f32.xlu0 %v904_v32 }
 0x55d   : > { %v897_v17 = vmul.f32 %v893_v41, %v893_v41 }
 0x55f   : > { %v907_v42 = vsel %vm212_vm0, %v897_v17, 0.0 }
 0x560   : > { %908 = vadd.xlane.f32.xlu1 %v907_v42 }
 0x5c8   : > { %v900_v13 = vpop.xlane.xlu0 %899 }
 0x5ca   : > { %v903_v37 = vpop.xlane.xlu1 %902 }
 0x5cb   : > { %v910_v29 = vadd.f32 %v903_v37, %v900_v13 }
 0x5cd   : > { %v911_v20 = vrot.slane %v910_v29, 4 }
 0x5cf   : > { %v912_v59 = vadd.f32 %v911_v20, %v910_v29 }
 0x5d1   : > { %v913_v62 = vrot.slane %v912_v59, 2 }
 0x5d3   : > { %v914_v5 = vadd.f32 %v913_v62, %v912_v59 }
 0x5d5   : > { %v915_v11 = vrot.slane %v914_v5, 1 }
 0x5d7   : > { %v916_v21 = vadd.f32 %v915_v11, %v914_v5 }
 0x5d9   : > { %v924_v14 = vmax.f32 %v916_v21, 1e-24 }
 0x5db   : > { %1290 = vrsqrt.f32 %v924_v14 }
 0x5e5   : > { %v1291_v19 = vpop.eup %1290 }
 0x5e6   : > { %v928_v0 = vmul.f32 %v1291_v19, %v890_v40  ;;  %v929_v1 = vmul.f32 %v1291_v19, %v891_v47 }
 0x5e8   : > { %932 = vst.msk [vmem:[%s166_s10] sm:$0xff] %vm212_vm0, %v928_v0  ;;  %933 = vst.msk [vmem:[%s166_s10 + $0x8] sm:$0xff] %vm212_vm0, %v929_v1 }
 0x5e9   : > { %v906_v44 = vpop.xlane.xlu0 %905 }
 0x5ed   : > { %v909_v43 = vpop.xlane.xlu1 %908 }
 0x5ee   : > { %v917_v45 = vadd.f32 %v909_v43, %v906_v44 }
 0x5f0   : > { %v918_v49 = vrot.slane %v917_v45, 4 }
 0x5f2   : > { %v919_v54 = vadd.f32 %v918_v49, %v917_v45 }
 0x5f4   : > { %v920_v27 = vrot.slane %v919_v54, 2 }
 0x5f6   : > { %v921_v9 = vadd.f32 %v920_v27, %v919_v54 }
 0x5f8   : > { %v922_v6 = vrot.slane %v921_v9, 1 }
 0x5fa   : > { %v923_v51 = vadd.f32 %v922_v6, %v921_v9 }
 0x5fc   : > { %v925_v55 = vmax.f32 %v923_v51, 1e-24 }
 0x5fe   : > { %1292 = vrsqrt.f32 %v925_v55 }
 0x608   : > { %v1293_v56 = vpop.eup %1292 }
 0x609   : > { %v930_v16 = vmul.f32 %v1293_v56, %v892_v36  ;;  %v931_v48 = vmul.f32 %v1293_v56, %v893_v41 }
 0x60b   : > { %934 = vst.msk [vmem:[%s166_s10 + $0x10] sm:$0xff] %vm212_vm0, %v930_v16  ;;  %935 = vst.msk [vmem:[%s166_s10 + $0x18] sm:$0xff] %vm212_vm0, %v931_v48 }
 0x60c   : > { %1307 = shalt.err (!%p1304_p3)
}
 0x60d   : > { %s1308_s29 = scalar_lea.hbm %s1807_s24, 512  ;;  %s1312_s5 = scalar_lea.hbm %s1857_s3, 1024 }
 0x60e   : > { %p1309_p4 = scmp.ne.s32.totalorder %s1807_s24, %s1308_s29  ;;  %p1313_p9 = scmp.lt.u32.totalorder %s1807_s24, %s1857_s3 }
 0x60f   : > { %p1314_p10 = scmp.lt.u32.totalorder %s1312_s5, %s1308_s29  ;;  %p1316_p12 = scmp.lt.u32.totalorder %s1308_s29, %s1807_s24 }
 0x610   : > { %p1310_p7 = pnand %p1309_p4, %p1423_p5 }
 0x611   : > { %p1315_p11 = por %p1314_p10, %p1313_p9 }
 0x612   : > { %p1311_p8 = pneg %p1310_p7 }
 0x613   : > { %p1317_p13 = por %p1316_p12, %p1315_p11 }
 0x615   : > { %p1318_p0 = pnand %p1317_p13, %p1311_p8 }
 0x617   : > { %1321 = shalt.err (!%p1318_p0)
}
 0x618   : > { %s1363_s8 = smov 128   ;;  %s1364_s9 = smov 8  }
 0x619   : > { %1139 = dma.vmem_to_hbm [thread:$0]  (%p1423_p5), %s1809_s17, 512, %s1807_s24, %s1813_s25, %s1363_s8, %s1363_s8, %s1364_s9  }
 0x61a PF: > { %p1145_p1 = scmp.ge.s32.totalorder %s1356_s15, 2  ;;  %s966_s10 = sand.u32 1, %s1344_s12  }
 0x61b   : > { %s967_s11 = scalar_lea.sflag [#allocation3], %s966_s10 }
 0x61c   : > { %p1142_p2 = pnand %p1145_p1, %p1427_p6 }
 0x61e   : > { %1339 = dma.done.wait (!%p1142_p2), %s967_s11, 512  }
 0x61f   : > { %1341 = vsyncadd (!%p1142_p2), %s967_s11, 4294966784  ;;  %p13_p3 = scmp.ge.s32.totalorder %s1410_s18, 4   ;;  %s1860_s12 = smov %s1348_s13 }
 0x620   : > { %s1861_s13 = smov %s1352_s14  ;;  %s1862_s14 = smov %s1421_s21 }
 0x621   : > { %s1863_s15 = smov %s1410_s18  ;;  %15 = sbr.rel (!%p13_p3) target bundleno = 3 (0x3), region = 67 }
 0x628   :  { %972 = vsyncpa [#allocation3], 1 }
 0x629   :  { %974 = vsyncpa [#allocation3 + $0x1], 1 }

</bundles_post_ra>
